<compile_context>
chip_gen: v6e
topology: v6e:2x2x1
jax: 0.10.0
libtpu: 0.0.40
codegen_flags: <defaults>
</compile_context>

<pallas_src>
import functools

import jax
import jax.numpy as jnp
from jax import lax
from jax.experimental import pallas as pl
from jax.experimental.pallas import tpu as pltpu

_CURVATURE = 1.0          # c of the Poincare ball
_ARTANH_EPS = 1e-5        # clamp used inside artanh (geoopt-style clamping)
_MIN_NORM = 1e-15         # safe-division floor


def _round_up(x, m):
    return ((x + m - 1) // m) * m


def _recip(x):
    """EUP approx reciprocal + 2 Newton steps (keeps f32-level accuracy, frees VALU)."""
    r = pl.reciprocal(x, approx=True)
    r = r * (2.0 - x * r)
    r = r * (2.0 - x * r)
    return r


def _artanh(x):
    """Kernel artanh: clamp + log, divide replaced by EUP reciprocal."""
    x = jnp.clip(x, -1.0 + _ARTANH_EPS, 1.0 - _ARTANH_EPS)
    return 0.5 * jnp.log((1.0 + x) * _recip(1.0 - x))


def _artanh_ref(x):
    x = jnp.clip(x, -1.0 + _ARTANH_EPS, 1.0 - _ARTANH_EPS)
    return 0.5 * jnp.log((1.0 + x) / (1.0 - x))


def _mobius_addnorm(x2, y2, xy, c):
    """||mobius_add(-x, y)|| from per-row <x,x>, <y,y>, <-x,y> (kernel version)."""
    A = 1.0 + 2.0 * c * xy + c * y2          # coeff of (-x)
    B = 1.0 - c * x2                         # coeff of y
    num2 = A * A * x2 + 2.0 * A * B * xy + B * B * y2
    den = jnp.maximum(1.0 + 2.0 * c * xy + c * c * x2 * y2, _MIN_NORM)
    return jnp.sqrt(jnp.maximum(num2, 0.0)) * _recip(den)


def _loss_kernel(u_ref, a_ref, r_ref, o_ref, *, total_b, tb, steps, exact):
    p = pl.program_id(0)          # "parallel" (TensorCore) index
    i = pl.program_id(1)          # sequential tile index within this core

    @pl.when(i == 0)
    def _():
        o_ref[...] = jnp.zeros_like(o_ref)

    c = jnp.float32(_CURVATURE)
    sqrt_c = jnp.sqrt(c)

    # Natural-layout (tb, D) blocks -> f32 -> (D, tb): rows land on the 128-wide lane axis,
    # so every per-row scalar below is a lane-dense (1, tb) row.  The transpose is XLU work
    # hidden under the (much larger) input DMA.
    u = jnp.transpose(u_ref[...].astype(jnp.float32))      # (D, tb)
    a = jnp.transpose(a_ref[...].astype(jnp.float32))      # (D, tb)
    r = r_ref[...].astype(jnp.float32)                      # (1, tb)

    # ---- dist(user, anime): reduce D over the sublane axis -> lane-dense (1, tb)
    x2 = jnp.sum(u * u, axis=0, keepdims=True)
    y2 = jnp.sum(a * a, axis=0, keepdims=True)
    xy = -jnp.sum(u * a, axis=0, keepdims=True)              # <-x, y>, negation folded
    d = (2.0 / sqrt_c) * _artanh(sqrt_c * _mobius_addnorm(x2, y2, xy, c))

    # ---- expmap0(ratings[..., None]) : 1-D tangent vectors
    rn = jnp.maximum(jnp.abs(r), _MIN_NORM)
    e = jnp.tanh(sqrt_c * rn) * r * _recip(sqrt_c * rn)

    # ---- dist(distances[..., None], rating_embeddings) in the 1-D ball
    d2 = (2.0 / sqrt_c) * _artanh(
        sqrt_c * _mobius_addnorm(d * d, e * e, -(d * e), c))

    # ---- accumulate into the resident lane-dense output block (mask only where needed)
    if exact:
        o_ref[...] += d2
    else:
        t = p * steps + i                                    # global tile index
        full_tile = (t + 1) * tb <= total_b

        @pl.when(full_tile)
        def _():
            o_ref[...] += d2

        @pl.when(jnp.logical_not(full_tile))
        def _():
            # Edge / overflow tile: Pallas edge-block padding is unspecified data, so the
            # mask must be applied before anything feeds the accumulator.
            col = t * tb + lax.broadcasted_iota(jnp.int32, (1, tb), 1)
            o_ref[...] += jnp.where(col < total_b, d2, 0.0)


def hyperbolic_distance_loss(user_output, anime_output, ratings, *, tb=None):
    """user_output, anime_output: (B, D) (any float dtype); ratings: (B,). Scalar f32 loss."""
    B, D = user_output.shape
    r2d = ratings.reshape(1, B)          # tiny; no copy / upcast of the big inputs

    # VMEM-aware tile derivation: conservative budget on 64-MiB parts (v7x), larger on
    # 128-MiB parts (v5e / v6e).
    vmem_cap = 64 * 1024 * 1024
    try:
        vmem_cap = int(pltpu.get_tpu_info().vmem_capacity_bytes)
    except Exception:
        pass
    big_vmem = vmem_cap >= 100 * 1024 * 1024
    budget = (48 if big_vmem else 24) * 1024 * 1024        # blocks + f32 working copies
    vmem_limit = (80 if big_vmem else 48) * 1024 * 1024

    itemsize = max(user_output.dtype.itemsize, anime_output.dtype.itemsize)
    if tb is None:
        # Per batch-column VMEM: 2 inputs x 2 buffers x D x itemsize + ~3 f32 working copies.
        per_col = D * (4 * itemsize + 12)
        tb = budget // max(per_col, 1)
    tb = min(int(tb), 8192, _round_up(B, 128))
    tb = max((tb // 128) * 128, 128)
    # TODO(synk): for very large D (>= ~4k) add a D grid axis with partial x2/y2/xy
    # accumulation instead of letting tb shrink below ~512.

    num_tiles = -(-B // tb)
    ncore = 2 if num_tiles >= 2 else 1      # split batch across TCs on v7x; no-op on 1-TC chips
    steps = -(-num_tiles // ncore)
    exact = (ncore * steps * tb == B)       # statically no padded / overflow columns

    def tile_idx(p, i):
        # Overflow tiles (only when num_tiles doesn't divide evenly) re-read the last valid
        # block; their columns are fully masked in-kernel.
        return jnp.minimum(p * steps + i, num_tiles - 1)

    kernel = functools.partial(_loss_kernel, total_b=B, tb=tb, steps=steps, exact=exact)

    out = pl.pallas_call(
        kernel,
        out_shape=jax.ShapeDtypeStruct((1, ncore * tb), jnp.float32),
        grid_spec=pltpu.PrefetchScalarGridSpec(
            num_scalar_prefetch=0,
            grid=(ncore, steps),
            in_specs=[
                pl.BlockSpec((tb, D), lambda p, i: (tile_idx(p, i), 0)),
                pl.BlockSpec((tb, D), lambda p, i: (tile_idx(p, i), 0)),
                pl.BlockSpec((1, tb), lambda p, i: (0, tile_idx(p, i))),
            ],
            # One resident (1, tb) partial-sum block per parallel index (accumulator across
            # the "arbitrary" axis); partials are summed in JAX below.
            out_specs=pl.BlockSpec((1, tb), lambda p, i: (0, p)),
        ),
        compiler_params=pltpu.CompilerParams(
            dimension_semantics=("parallel", "arbitrary"),
            vmem_limit_bytes=vmem_limit,
        ),
    )(user_output, anime_output, r2d)

    return jnp.sum(out) / jnp.float32(B)


def _reference(user_output, anime_output, ratings):
    """Pure-JAX reference of the same math (geoopt Poincare ball, c = 1)."""
    c = _CURVATURE
    sqrt_c = jnp.sqrt(jnp.float32(c))

    def dist(x, y):
        x2 = jnp.sum(x * x, axis=-1)
        y2 = jnp.sum(y * y, axis=-1)
        xy = -jnp.sum(x * y, axis=-1)
        A = 1.0 + 2.0 * c * xy + c * y2
        B = 1.0 - c * x2
        num2 = A * A * x2 + 2.0 * A * B * xy + B * B * y2
        den = jnp.maximum(1.0 + 2.0 * c * xy + c * c * x2 * y2, _MIN_NORM)
        nrm = jnp.sqrt(jnp.maximum(num2, 0.0)) / den
        return (2.0 / sqrt_c) * _artanh_ref(sqrt_c * nrm)

    d = dist(user_output, anime_output)
    r = ratings[:, None]
    rn = jnp.maximum(jnp.abs(r), _MIN_NORM)
    e = jnp.tanh(sqrt_c * rn) * r / (sqrt_c * rn)
    return jnp.mean(dist(d[:, None], e))


if __name__ == "__main__":
    key = jax.random.PRNGKey(0)
    k1, k2, k3, k4 = jax.random.split(key, 4)

    B, D = 200, 32   # B not a multiple of 128 -> exercises edge-block masking
    user = 0.15 * jax.random.normal(k1, (B, D), dtype=jnp.float32) / jnp.sqrt(D)
    anime = 0.15 * jax.random.normal(k2, (B, D), dtype=jnp.float32) / jnp.sqrt(D)
    # Well-conditioned regime (away from the artanh clamp) for the exact comparisons.
    ratings = jax.random.uniform(k3, (B,), dtype=jnp.float32, minval=0.2, maxval=1.5)

    ref = _reference(user, anime, ratings)

    # Multi-tile / two-core path: grid (2, 1), partially-valid last tile (masking).
    loss_tiled = hyperbolic_distance_loss(user, anime, ratings, tb=128)
    jax.block_until_ready(loss_tiled)
    assert jnp.allclose(loss_tiled, ref, atol=2e-3, rtol=2e-3), (loss_tiled, ref)

    # Single-tile path with the auto-derived tile size.
    loss = hyperbolic_distance_loss(user, anime, ratings)
    jax.block_until_ready(loss)
    assert jnp.allclose(loss, ref, atol=2e-3, rtol=2e-3), (loss, ref)

    # bf16 inputs stream at half the HBM bytes; compare against the f32 reference evaluated
    # on the same (bf16-rounded) values so only kernel-internal numerics differ.
    user_bf = user.astype(jnp.bfloat16)
    anime_bf = anime.astype(jnp.bfloat16)
    ref_bf = _reference(user_bf.astype(jnp.float32), anime_bf.astype(jnp.float32), ratings)
    loss_bf = hyperbolic_distance_loss(user_bf, anime_bf, ratings, tb=128)
    jax.block_until_ready(loss_bf)
    assert jnp.allclose(loss_bf, ref_bf, atol=3e-3, rtol=3e-3), (loss_bf, ref_bf)

    # Realistic rating range (1..10) pushes expmap0 points to the ball boundary, where the
    # artanh clamp makes the exact value FP-order dependent; check finiteness only.
    big_ratings = jax.random.uniform(k4, (B,), dtype=jnp.float32, minval=1.0, maxval=10.0)
    loss_big = hyperbolic_distance_loss(user, anime, big_ratings, tb=128)
    jax.block_until_ready(loss_big)
    assert bool(jnp.isfinite(loss_big)), loss_big

    print("KERNEL_OK")
</pallas_src>

<mosaic_0001>
module attributes {stable_mosaic.version = 11 : i64} {
  func.func @_loss_kernel(%arg0: i32, %arg1: i32, %arg2: memref<128x32xf32, #tpu.memory_space<vmem>>, %arg3: memref<128x32xf32, #tpu.memory_space<vmem>>, %arg4: memref<1x128xf32, #tpu.memory_space<vmem>>, %arg5: memref<1x128xf32, #tpu.memory_space<vmem>>) attributes {dimension_semantics = [#tpu.dimension_semantics<parallel>, #tpu.dimension_semantics<arbitrary>], iteration_bounds = array<i64: 2, 1>, scalar_prefetch = 0 : i64, scratch_operands = 0 : i64, tpu.core_type = #tpu.core_type<tc>, window_params = [{transform_indices = @transform_0, window_bounds = array<i64: 128, 32>}, {transform_indices = @transform_1, window_bounds = array<i64: 128, 32>}, {transform_indices = @transform_2, window_bounds = array<i64: 1, 128>}, {transform_indices = @transform_3, window_bounds = array<i64: 1, 128>}]} {
    %c0_i32 = arith.constant 0 : i32
    %0 = arith.cmpi eq, %arg1, %c0_i32 : i32
    %1 = arith.extui %0 : i1 to i32
    %c0_i32_0 = arith.constant 0 : i32
    %2 = arith.cmpi ne, %1, %c0_i32_0 : i32
    scf.if %2 {
      %cst_65 = arith.constant 0.000000e+00 : f32
      %200 = vector.broadcast %cst_65 : f32 to vector<1x128xf32>
      %c0_66 = arith.constant 0 : index
      %c0_67 = arith.constant 0 : index
      %201 = vector.load %arg5[%c0_66, %c0_67] : memref<1x128xf32, #tpu.memory_space<vmem>>, vector<1x128xf32>
      tpu.vector_store %arg5[%c0_66, %c0_67], %200 {strides = array<i32>} : memref<1x128xf32, #tpu.memory_space<vmem>>, vector<1x128xf32>,
    } else {
    }
    %cst = arith.constant 1.000000e+00 : f32
    %3 = math.sqrt %cst : f32
    %c0 = arith.constant 0 : index
    %c0_1 = arith.constant 0 : index
    %4 = vector.load %arg2[%c0, %c0_1] : memref<128x32xf32, #tpu.memory_space<vmem>>, vector<128x32xf32>
    %5 = tpu.transpose %4, [1, 0] : vector<128x32xf32> -> vector<32x128xf32>
    %c0_2 = arith.constant 0 : index
    %c0_3 = arith.constant 0 : index
    %6 = vector.load %arg3[%c0_2, %c0_3] : memref<128x32xf32, #tpu.memory_space<vmem>>, vector<128x32xf32>
    %7 = tpu.transpose %6, [1, 0] : vector<128x32xf32> -> vector<32x128xf32>
    %c0_4 = arith.constant 0 : index
    %c0_5 = arith.constant 0 : index
    %8 = vector.load %arg4[%c0_4, %c0_5] : memref<1x128xf32, #tpu.memory_space<vmem>>, vector<1x128xf32>
    %9 = arith.mulf %5, %5 : vector<32x128xf32>
    %cst_6 = arith.constant dense<0.000000e+00> : vector<128xf32>
    %10 = vector.multi_reduction <add>, %9, %cst_6 [0] : vector<32x128xf32> to vector<128xf32>
    %11 = vector.shape_cast %10 : vector<128xf32> to vector<1x128xf32>
    %12 = arith.mulf %7, %7 : vector<32x128xf32>
    %cst_7 = arith.constant dense<0.000000e+00> : vector<128xf32>
    %13 = vector.multi_reduction <add>, %12, %cst_7 [0] : vector<32x128xf32> to vector<128xf32>
    %14 = vector.shape_cast %13 : vector<128xf32> to vector<1x128xf32>
    %15 = arith.mulf %5, %7 : vector<32x128xf32>
    %cst_8 = arith.constant dense<0.000000e+00> : vector<128xf32>
    %16 = vector.multi_reduction <add>, %15, %cst_8 [0] : vector<32x128xf32> to vector<128xf32>
    %17 = vector.shape_cast %16 : vector<128xf32> to vector<1x128xf32>
    %cst_9 = arith.constant 0.000000e+00 : f32
    %18 = vector.broadcast %cst_9 : f32 to vector<1x128xf32>
    %19 = arith.subf %18, %17 : vector<1x128xf32>
    %cst_10 = arith.constant 2.000000e+00 : f32
    %20 = arith.divf %cst_10, %3 : f32
    %cst_11 = arith.constant 2.000000e+00 : f32
    %cst_12 = arith.constant 1.000000e+00 : f32
    %21 = arith.mulf %cst_11, %cst_12 : f32
    %22 = vector.broadcast %21 : f32 to vector<1x128xf32>
    %23 = arith.mulf %22, %19 : vector<1x128xf32>
    %cst_13 = arith.constant 1.000000e+00 : f32
    %24 = vector.broadcast %cst_13 : f32 to vector<1x128xf32>
    %25 = arith.addf %24, %23 : vector<1x128xf32>
    %cst_14 = arith.constant 1.000000e+00 : f32
    %26 = vector.broadcast %cst_14 : f32 to vector<1x128xf32>
    %27 = arith.mulf %26, %14 : vector<1x128xf32>
    %28 = arith.addf %25, %27 : vector<1x128xf32>
    %cst_15 = arith.constant 1.000000e+00 : f32
    %29 = vector.broadcast %cst_15 : f32 to vector<1x128xf32>
    %30 = arith.mulf %29, %11 : vector<1x128xf32>
    %cst_16 = arith.constant 1.000000e+00 : f32
    %31 = vector.broadcast %cst_16 : f32 to vector<1x128xf32>
    %32 = arith.subf %31, %30 : vector<1x128xf32>
    %33 = arith.mulf %28, %28 : vector<1x128xf32>
    %34 = arith.mulf %33, %11 : vector<1x128xf32>
    %cst_17 = arith.constant 2.000000e+00 : f32
    %35 = vector.broadcast %cst_17 : f32 to vector<1x128xf32>
    %36 = arith.mulf %35, %28 : vector<1x128xf32>
    %37 = arith.mulf %36, %32 : vector<1x128xf32>
    %38 = arith.mulf %37, %19 : vector<1x128xf32>
    %39 = arith.addf %34, %38 : vector<1x128xf32>
    %40 = arith.mulf %32, %32 : vector<1x128xf32>
    %41 = arith.mulf %40, %14 : vector<1x128xf32>
    %42 = arith.addf %39, %41 : vector<1x128xf32>
    %cst_18 = arith.constant 2.000000e+00 : f32
    %cst_19 = arith.constant 1.000000e+00 : f32
    %43 = arith.mulf %cst_18, %cst_19 : f32
    %44 = vector.broadcast %43 : f32 to vector<1x128xf32>
    %45 = arith.mulf %44, %19 : vector<1x128xf32>
    %cst_20 = arith.constant 1.000000e+00 : f32
    %46 = vector.broadcast %cst_20 : f32 to vector<1x128xf32>
    %47 = arith.addf %46, %45 : vector<1x128xf32>
    %cst_21 = arith.constant 1.000000e+00 : f32
    %cst_22 = arith.constant 1.000000e+00 : f32
    %48 = arith.mulf %cst_21, %cst_22 : f32
    %49 = vector.broadcast %48 : f32 to vector<1x128xf32>
    %50 = arith.mulf %49, %11 : vector<1x128xf32>
    %51 = arith.mulf %50, %14 : vector<1x128xf32>
    %52 = arith.addf %47, %51 : vector<1x128xf32>
    %cst_23 = arith.constant 1.000000e-15 : f32
    %53 = vector.broadcast %cst_23 : f32 to vector<1x128xf32>
    %54 = arith.maximumf %52, %53 : vector<1x128xf32>
    %cst_24 = arith.constant 0.000000e+00 : f32
    %55 = vector.broadcast %cst_24 : f32 to vector<1x128xf32>
    %56 = arith.maximumf %42, %55 : vector<1x128xf32>
    %57 = math.sqrt %56 : vector<1x128xf32>
    %58 = tpu.reciprocal %54 {approx = true} : vector<1x128xf32> -> vector<1x128xf32>
    %59 = arith.mulf %54, %58 : vector<1x128xf32>
    %cst_25 = arith.constant 2.000000e+00 : f32
    %60 = vector.broadcast %cst_25 : f32 to vector<1x128xf32>
    %61 = arith.subf %60, %59 : vector<1x128xf32>
    %62 = arith.mulf %58, %61 : vector<1x128xf32>
    %63 = arith.mulf %54, %62 : vector<1x128xf32>
    %cst_26 = arith.constant 2.000000e+00 : f32
    %64 = vector.broadcast %cst_26 : f32 to vector<1x128xf32>
    %65 = arith.subf %64, %63 : vector<1x128xf32>
    %66 = arith.mulf %62, %65 : vector<1x128xf32>
    %67 = arith.mulf %57, %66 : vector<1x128xf32>
    %68 = vector.broadcast %3 : f32 to vector<1x128xf32>
    %69 = arith.mulf %68, %67 : vector<1x128xf32>
    %cst_27 = arith.constant -0.999989986 : f32
    %cst_28 = arith.constant 0.999989986 : f32
    %70 = vector.broadcast %cst_27 : f32 to vector<1x128xf32>
    %71 = arith.maximumf %70, %69 : vector<1x128xf32>
    %72 = vector.broadcast %cst_28 : f32 to vector<1x128xf32>
    %73 = arith.minimumf %72, %71 : vector<1x128xf32>
    %cst_29 = arith.constant 1.000000e+00 : f32
    %74 = vector.broadcast %cst_29 : f32 to vector<1x128xf32>
    %75 = arith.addf %74, %73 : vector<1x128xf32>
    %cst_30 = arith.constant 1.000000e+00 : f32
    %76 = vector.broadcast %cst_30 : f32 to vector<1x128xf32>
    %77 = arith.subf %76, %73 : vector<1x128xf32>
    %78 = tpu.reciprocal %77 {approx = true} : vector<1x128xf32> -> vector<1x128xf32>
    %79 = arith.mulf %77, %78 : vector<1x128xf32>
    %cst_31 = arith.constant 2.000000e+00 : f32
    %80 = vector.broadcast %cst_31 : f32 to vector<1x128xf32>
    %81 = arith.subf %80, %79 : vector<1x128xf32>
    %82 = arith.mulf %78, %81 : vector<1x128xf32>
    %83 = arith.mulf %77, %82 : vector<1x128xf32>
    %cst_32 = arith.constant 2.000000e+00 : f32
    %84 = vector.broadcast %cst_32 : f32 to vector<1x128xf32>
    %85 = arith.subf %84, %83 : vector<1x128xf32>
    %86 = arith.mulf %82, %85 : vector<1x128xf32>
    %87 = arith.mulf %75, %86 : vector<1x128xf32>
    %88 = math.log %87 : vector<1x128xf32>
    %cst_33 = arith.constant 5.000000e-01 : f32
    %89 = vector.broadcast %cst_33 : f32 to vector<1x128xf32>
    %90 = arith.mulf %89, %88 : vector<1x128xf32>
    %91 = vector.broadcast %20 : f32 to vector<1x128xf32>
    %92 = arith.mulf %91, %90 : vector<1x128xf32>
    %93 = math.absf %8 : vector<1x128xf32>
    %cst_34 = arith.constant 1.000000e-15 : f32
    %94 = vector.broadcast %cst_34 : f32 to vector<1x128xf32>
    %95 = arith.maximumf %93, %94 : vector<1x128xf32>
    %96 = vector.broadcast %3 : f32 to vector<1x128xf32>
    %97 = arith.mulf %96, %95 : vector<1x128xf32>
    %98 = math.tanh %97 : vector<1x128xf32>
    %99 = arith.mulf %98, %8 : vector<1x128xf32>
    %100 = vector.broadcast %3 : f32 to vector<1x128xf32>
    %101 = arith.mulf %100, %95 : vector<1x128xf32>
    %102 = tpu.reciprocal %101 {approx = true} : vector<1x128xf32> -> vector<1x128xf32>
    %103 = arith.mulf %101, %102 : vector<1x128xf32>
    %cst_35 = arith.constant 2.000000e+00 : f32
    %104 = vector.broadcast %cst_35 : f32 to vector<1x128xf32>
    %105 = arith.subf %104, %103 : vector<1x128xf32>
    %106 = arith.mulf %102, %105 : vector<1x128xf32>
    %107 = arith.mulf %101, %106 : vector<1x128xf32>
    %cst_36 = arith.constant 2.000000e+00 : f32
    %108 = vector.broadcast %cst_36 : f32 to vector<1x128xf32>
    %109 = arith.subf %108, %107 : vector<1x128xf32>
    %110 = arith.mulf %106, %109 : vector<1x128xf32>
    %111 = arith.mulf %99, %110 : vector<1x128xf32>
    %cst_37 = arith.constant 2.000000e+00 : f32
    %112 = arith.divf %cst_37, %3 : f32
    %113 = arith.mulf %92, %92 : vector<1x128xf32>
    %114 = arith.mulf %111, %111 : vector<1x128xf32>
    %115 = arith.mulf %92, %111 : vector<1x128xf32>
    %cst_38 = arith.constant 0.000000e+00 : f32
    %116 = vector.broadcast %cst_38 : f32 to vector<1x128xf32>
    %117 = arith.subf %116, %115 : vector<1x128xf32>
    %cst_39 = arith.constant 2.000000e+00 : f32
    %cst_40 = arith.constant 1.000000e+00 : f32
    %118 = arith.mulf %cst_39, %cst_40 : f32
    %119 = vector.broadcast %118 : f32 to vector<1x128xf32>
    %120 = arith.mulf %119, %117 : vector<1x128xf32>
    %cst_41 = arith.constant 1.000000e+00 : f32
    %121 = vector.broadcast %cst_41 : f32 to vector<1x128xf32>
    %122 = arith.addf %121, %120 : vector<1x128xf32>
    %cst_42 = arith.constant 1.000000e+00 : f32
    %123 = vector.broadcast %cst_42 : f32 to vector<1x128xf32>
    %124 = arith.mulf %123, %114 : vector<1x128xf32>
    %125 = arith.addf %122, %124 : vector<1x128xf32>
    %cst_43 = arith.constant 1.000000e+00 : f32
    %126 = vector.broadcast %cst_43 : f32 to vector<1x128xf32>
    %127 = arith.mulf %126, %113 : vector<1x128xf32>
    %cst_44 = arith.constant 1.000000e+00 : f32
    %128 = vector.broadcast %cst_44 : f32 to vector<1x128xf32>
    %129 = arith.subf %128, %127 : vector<1x128xf32>
    %130 = arith.mulf %125, %125 : vector<1x128xf32>
    %131 = arith.mulf %130, %113 : vector<1x128xf32>
    %cst_45 = arith.constant 2.000000e+00 : f32
    %132 = vector.broadcast %cst_45 : f32 to vector<1x128xf32>
    %133 = arith.mulf %132, %125 : vector<1x128xf32>
    %134 = arith.mulf %133, %129 : vector<1x128xf32>
    %135 = arith.mulf %134, %117 : vector<1x128xf32>
    %136 = arith.addf %131, %135 : vector<1x128xf32>
    %137 = arith.mulf %129, %129 : vector<1x128xf32>
    %138 = arith.mulf %137, %114 : vector<1x128xf32>
    %139 = arith.addf %136, %138 : vector<1x128xf32>
    %cst_46 = arith.constant 2.000000e+00 : f32
    %cst_47 = arith.constant 1.000000e+00 : f32
    %140 = arith.mulf %cst_46, %cst_47 : f32
    %141 = vector.broadcast %140 : f32 to vector<1x128xf32>
    %142 = arith.mulf %141, %117 : vector<1x128xf32>
    %cst_48 = arith.constant 1.000000e+00 : f32
    %143 = vector.broadcast %cst_48 : f32 to vector<1x128xf32>
    %144 = arith.addf %143, %142 : vector<1x128xf32>
    %cst_49 = arith.constant 1.000000e+00 : f32
    %cst_50 = arith.constant 1.000000e+00 : f32
    %145 = arith.mulf %cst_49, %cst_50 : f32
    %146 = vector.broadcast %145 : f32 to vector<1x128xf32>
    %147 = arith.mulf %146, %113 : vector<1x128xf32>
    %148 = arith.mulf %147, %114 : vector<1x128xf32>
    %149 = arith.addf %144, %148 : vector<1x128xf32>
    %cst_51 = arith.constant 1.000000e-15 : f32
    %150 = vector.broadcast %cst_51 : f32 to vector<1x128xf32>
    %151 = arith.maximumf %149, %150 : vector<1x128xf32>
    %cst_52 = arith.constant 0.000000e+00 : f32
    %152 = vector.broadcast %cst_52 : f32 to vector<1x128xf32>
    %153 = arith.maximumf %139, %152 : vector<1x128xf32>
    %154 = math.sqrt %153 : vector<1x128xf32>
    %155 = tpu.reciprocal %151 {approx = true} : vector<1x128xf32> -> vector<1x128xf32>
    %156 = arith.mulf %151, %155 : vector<1x128xf32>
    %cst_53 = arith.constant 2.000000e+00 : f32
    %157 = vector.broadcast %cst_53 : f32 to vector<1x128xf32>
    %158 = arith.subf %157, %156 : vector<1x128xf32>
    %159 = arith.mulf %155, %158 : vector<1x128xf32>
    %160 = arith.mulf %151, %159 : vector<1x128xf32>
    %cst_54 = arith.constant 2.000000e+00 : f32
    %161 = vector.broadcast %cst_54 : f32 to vector<1x128xf32>
    %162 = arith.subf %161, %160 : vector<1x128xf32>
    %163 = arith.mulf %159, %162 : vector<1x128xf32>
    %164 = arith.mulf %154, %163 : vector<1x128xf32>
    %165 = vector.broadcast %3 : f32 to vector<1x128xf32>
    %166 = arith.mulf %165, %164 : vector<1x128xf32>
    %cst_55 = arith.constant -0.999989986 : f32
    %cst_56 = arith.constant 0.999989986 : f32
    %167 = vector.broadcast %cst_55 : f32 to vector<1x128xf32>
    %168 = arith.maximumf %167, %166 : vector<1x128xf32>
    %169 = vector.broadcast %cst_56 : f32 to vector<1x128xf32>
    %170 = arith.minimumf %169, %168 : vector<1x128xf32>
    %cst_57 = arith.constant 1.000000e+00 : f32
    %171 = vector.broadcast %cst_57 : f32 to vector<1x128xf32>
    %172 = arith.addf %171, %170 : vector<1x128xf32>
    %cst_58 = arith.constant 1.000000e+00 : f32
    %173 = vector.broadcast %cst_58 : f32 to vector<1x128xf32>
    %174 = arith.subf %173, %170 : vector<1x128xf32>
    %175 = tpu.reciprocal %174 {approx = true} : vector<1x128xf32> -> vector<1x128xf32>
    %176 = arith.mulf %174, %175 : vector<1x128xf32>
    %cst_59 = arith.constant 2.000000e+00 : f32
    %177 = vector.broadcast %cst_59 : f32 to vector<1x128xf32>
    %178 = arith.subf %177, %176 : vector<1x128xf32>
    %179 = arith.mulf %175, %178 : vector<1x128xf32>
    %180 = arith.mulf %174, %179 : vector<1x128xf32>
    %cst_60 = arith.constant 2.000000e+00 : f32
    %181 = vector.broadcast %cst_60 : f32 to vector<1x128xf32>
    %182 = arith.subf %181, %180 : vector<1x128xf32>
    %183 = arith.mulf %179, %182 : vector<1x128xf32>
    %184 = arith.mulf %172, %183 : vector<1x128xf32>
    %185 = math.log %184 : vector<1x128xf32>
    %cst_61 = arith.constant 5.000000e-01 : f32
    %186 = vector.broadcast %cst_61 : f32 to vector<1x128xf32>
    %187 = arith.mulf %186, %185 : vector<1x128xf32>
    %188 = vector.broadcast %112 : f32 to vector<1x128xf32>
    %189 = arith.mulf %188, %187 : vector<1x128xf32>
    %c1_i32 = arith.constant 1 : i32
    %190 = arith.muli %arg0, %c1_i32 : i32
    %191 = arith.addi %190, %arg1 : i32
    %c1_i32_62 = arith.constant 1 : i32
    %192 = arith.addi %191, %c1_i32_62 : i32
    %c128_i32 = arith.constant 128 : i32
    %193 = arith.muli %192, %c128_i32 : i32
    %c200_i32 = arith.constant 200 : i32
    %194 = arith.cmpi sle, %193, %c200_i32 : i32
    %195 = arith.extui %194 : i1 to i32
    %c0_i32_63 = arith.constant 0 : i32
    %196 = arith.cmpi ne, %195, %c0_i32_63 : i32
    scf.if %196 {
      %c0_65 = arith.constant 0 : index
      %c0_66 = arith.constant 0 : index
      %200 = vector.load %arg5[%c0_65, %c0_66] : memref<1x128xf32, #tpu.memory_space<vmem>>, vector<1x128xf32>
      %201 = arith.addf %200, %189 : vector<1x128xf32>
      %c0_67 = arith.constant 0 : index
      %c0_68 = arith.constant 0 : index
      %202 = vector.load %arg5[%c0_67, %c0_68] : memref<1x128xf32, #tpu.memory_space<vmem>>, vector<1x128xf32>
      tpu.vector_store %arg5[%c0_67, %c0_68], %201 {strides = array<i32>} : memref<1x128xf32, #tpu.memory_space<vmem>>, vector<1x128xf32>,
    } else {
    }
    %true = arith.constant true
    %197 = arith.xori %194, %true : i1
    %198 = arith.extui %197 : i1 to i32
    %c0_i32_64 = arith.constant 0 : i32
    %199 = arith.cmpi ne, %198, %c0_i32_64 : i32
    scf.if %199 {
      %c128_i32_65 = arith.constant 128 : i32
      %200 = arith.muli %191, %c128_i32_65 : i32
      %201 = tpu.iota {dimensions = array<i32: 1>} : vector<1x128xi32>
      %202 = vector.broadcast %200 : i32 to vector<1x128xi32>
      %203 = arith.addi %202, %201 : vector<1x128xi32>
      %c0_66 = arith.constant 0 : index
      %c0_67 = arith.constant 0 : index
      %204 = vector.load %arg5[%c0_66, %c0_67] : memref<1x128xf32, #tpu.memory_space<vmem>>, vector<1x128xf32>
      %c200_i32_68 = arith.constant 200 : i32
      %205 = vector.broadcast %c200_i32_68 : i32 to vector<1x128xi32>
      %206 = arith.cmpi slt, %203, %205 : vector<1x128xi32>
      %cst_69 = arith.constant 0.000000e+00 : f32
      %207 = vector.broadcast %cst_69 : f32 to vector<1x128xf32>
      %208 = arith.select %206, %189, %207 : vector<1x128xi1>, vector<1x128xf32>
      %209 = arith.addf %204, %208 : vector<1x128xf32>
      %c0_70 = arith.constant 0 : index
      %c0_71 = arith.constant 0 : index
      %210 = vector.load %arg5[%c0_70, %c0_71] : memref<1x128xf32, #tpu.memory_space<vmem>>, vector<1x128xf32>
      tpu.vector_store %arg5[%c0_70, %c0_71], %209 {strides = array<i32>} : memref<1x128xf32, #tpu.memory_space<vmem>>, vector<1x128xf32>,
    } else {
    }
    return
  }
  func.func @transform_0(%arg0: i32, %arg1: i32) -> (i32, i32) {
    %c1_i32 = arith.constant 1 : i32
    %0 = arith.muli %arg0, %c1_i32 : i32
    %1 = arith.addi %0, %arg1 : i32
    %c1_i32_0 = arith.constant 1 : i32
    %2 = arith.minsi %1, %c1_i32_0 : i32
    %c0_i32 = arith.constant 0 : i32
    %c0_i32_1 = arith.constant 0 : i32
    return %2, %c0_i32 : i32, i32
  }
  func.func @transform_1(%arg0: i32, %arg1: i32) -> (i32, i32) {
    %c1_i32 = arith.constant 1 : i32
    %0 = arith.muli %arg0, %c1_i32 : i32
    %1 = arith.addi %0, %arg1 : i32
    %c1_i32_0 = arith.constant 1 : i32
    %2 = arith.minsi %1, %c1_i32_0 : i32
    %c0_i32 = arith.constant 0 : i32
    %c0_i32_1 = arith.constant 0 : i32
    return %2, %c0_i32 : i32, i32
  }
  func.func @transform_2(%arg0: i32, %arg1: i32) -> (i32, i32) {
    %c1_i32 = arith.constant 1 : i32
    %0 = arith.muli %arg0, %c1_i32 : i32
    %1 = arith.addi %0, %arg1 : i32
    %c1_i32_0 = arith.constant 1 : i32
    %2 = arith.minsi %1, %c1_i32_0 : i32
    %c0_i32 = arith.constant 0 : i32
    %c0_i32_1 = arith.constant 0 : i32
    return %c0_i32, %2 : i32, i32
  }
  func.func @transform_3(%arg0: i32, %arg1: i32) -> (i32, i32) {
    %c0_i32 = arith.constant 0 : i32
    %c0_i32_0 = arith.constant 0 : i32
    return %c0_i32, %arg0 : i32, i32
  }
}

</mosaic_0001>

<bundles_post_ra>
// kernel: tpu_custom_call.1
= control target key start
LH: loop header
LB: loop body
LE: loop exit
PB: predicated region body
PF: predicated region fallthrough
CT: control target
= control target key end

     0   :  { %8 = vsyncpa [#allocation3], 0  ;;  %s1068_s0 = inlined_call_operand.vmem [shape: f32[200,32], index: 0, kind: input, shape index: {}]   ;;  %s1069_s1 = inlined_call_operand.vmem [shape: f32[200,32], index: 1, kind: input, shape index: {}]   ;;  %s1070_s2 = inlined_call_operand.vmem [shape: f32[1,200], index: 2, kind: input, shape index: {}]   ;;  %s1071_s3 = inlined_call_operand.hbm [shape: f32[1,256], index: 3, kind: output, shape index: {}]  }
   0x1   :  { %10 = vsyncpa [#allocation3 + $0x1], 0  ;;  %s895_s12 = smov 0   ;;  %s897_s13 = smov 0  }
   0x2   :  { %s899_s14 = smov 0   ;;  %s901_s15 = smov 0  }
   0x3   :  { %s903_s16 = smov 0   ;;  %s905_s17 = smov 0  }
   0x4 LB: > { %s696_s18 = sadd.s32 4294967295, %s871_s17   ;;  %s697_s19 = sadd.s32 4294967294, %s871_s17   ;;  %s871_s17 = sphi %s905_s17, %s16_s17   ;;  %s867_s16 = sphi %s903_s16, %s1078_s16   ;;  %s863_s15 = sphi %s901_s15, %s1077_s15   ;;  %s859_s14 = sphi %s899_s14, %s1076_s14   ;;  %s855_s13 = sphi %s897_s13, %s1075_s13   ;;  %s851_s12 = sphi %s895_s12, %s1074_s12  }
   0x5   : > { %s28_s20 = sadd.s32 1, %s867_s16  ;;  %s131_s21 = sadd.s32 1, %s859_s14 }
   0x6   : > { %p30_p0 = scmp.ge.s32.totalorder %s28_s20, 2  ;;  %p141_p1 = scmp.ne.s32.totalorder %s859_s14, %s855_s13 }
   0x7   : > { %p142_p2 = scmp.eq.s32.totalorder %s696_s18, 1  ;;  %p147_p3 = scmp.ne.s32.totalorder %s855_s13, %s851_s12 }
   0x8   : > { %s1080_s20 = smov (%p30_p0, %s28_s20), 0  ;;  %p148_p5 = scmp.eq.s32.totalorder %s697_s19, 1 }
   0x9   : > { %p935_p4 = por %p142_p2, %p141_p1  ;;  %s128_s23 = ssub.s32 %s867_s16, %s1080_s20 }
   0xa   : > { %p700_p6 = scmp.ge.s32.totalorder %s871_s17, 1  ;;  %p129_p7 = scmp.eq.s32.totalorder %s128_s23, 0 }
   0xb   : > { %p942_p8 = por %p148_p5, %p147_p3  ;;  %p224_p9 = scmp.lt.s32.totalorder %s871_s17, 3 }
   0xc   : > { %s948_s25 = scalar_select %p129_p7, %s859_s14, %s131_s21  }
   0xd   : > { %p225_p10 = pnand %p700_p6, %p224_p9 }
   0xe   : > { %p273_p11 = scmp.lt.s32.totalorder (!%p225_p10), %s863_s15, 1  ;;  %s270_s11 = sand.u32 (!%p225_p10), 1, %s855_s13  }
   0xf   : > { %228 = sbr.rel (%p225_p10) target bundleno = 413 (0x19d), region = 32  ;;  %s717_s18 = sshll.u32 (!%p225_p10), %s863_s15, 7 }
  0x10   : > { %s1012_s19 = scalar_lea.vmem (!%p225_p10), [#allocation2], %s270_s11  ;;  %s1017_s21 = sadd.s32 (!%p225_p10), 128, %s717_s18 }
  0x11   : > { %p711_p13 = scmp.gt.s32.totalorder (!%p225_p10), %s1017_s21, 200 }
  0x14   : > { %s954_s26 = scalar_select %p273_p11, %s863_s15, 1 }
  0x16   : > { %s701_s27 = sshll.u32 %s954_s26, 4  ;;  %s1084_s26 = smov (!%p273_p11, %s954_s26), 1 }
  0x17   : > { %p280_p12 = scmp.lt.s32.totalorder %s701_s27, 24  ;;  %s317_s10 = scalar_lea.vmem %s1070_s2, %s1084_s26 }
  0x19   : > { %s1082_s27 = smov (!%p280_p12, %s701_s27), 24 }
  0x1a   : > { %s702_s28 = sshll.u32 %s1082_s27, 3 }
  0x1b   : > { %s960_s4 = scalar_lea.vmem %s1069_s1, %s702_s28  ;;  %s965_s7 = scalar_lea.vmem %s1068_s0, %s702_s28 }
  0x1c   : > { %v374_v0 = vld [vmem:[%s960_s4] sm:$0xff]  ;;  %v375_v2 = vld [vmem:[%s960_s4 + $0x8] sm:$0xff]  ;;  %v376_v4 = vld [vmem:[%s960_s4 + $0x10] sm:$0xff] }
  0x1d   : > { %v326_v1 = vld [vmem:[%s965_s7] sm:$0xff]  ;;  %390 = vxpose.xlu1.b32.start [1/16] (narrow) %v374_v0, 32  ;;  %v327_v3 = vld [vmem:[%s965_s7 + $0x8] sm:$0xff]  ;;  %v328_v5 = vld [vmem:[%s965_s7 + $0x10] sm:$0xff] }
  0x1e   : > { %342 = vxpose.xlu0.b32.start [1/16] (narrow) %v326_v1, 32  ;;  %v377_v6 = vld [vmem:[%s960_s4 + $0x18] sm:$0xff]  ;;  %v378_v8 = vld [vmem:[%s960_s4 + $0x20] sm:$0xff]  ;;  %v379_v10 = vld [vmem:[%s960_s4 + $0x28] sm:$0xff] }
  0x1f   : > { %v329_v7 = vld [vmem:[%s965_s7 + $0x18] sm:$0xff]  ;;  %v330_v9 = vld [vmem:[%s965_s7 + $0x20] sm:$0xff]  ;;  %v331_v11 = vld [vmem:[%s965_s7 + $0x28] sm:$0xff] }
  0x20   : > { %v380_v12 = vld [vmem:[%s960_s4 + $0x30] sm:$0xff]  ;;  %v381_v14 = vld [vmem:[%s960_s4 + $0x38] sm:$0xff]  ;;  %v382_v16 = vld [vmem:[%s960_s4 + $0x40] sm:$0xff] }
  0x21   : > { %391 = vxpose.xlu1.b32.cont [2/16] (narrow) %v375_v2, 32  ;;  %v332_v13 = vld [vmem:[%s965_s7 + $0x30] sm:$0xff]  ;;  %v333_v15 = vld [vmem:[%s965_s7 + $0x38] sm:$0xff]  ;;  %v334_v17 = vld [vmem:[%s965_s7 + $0x40] sm:$0xff] }
  0x22   : > { %343 = vxpose.xlu0.b32.cont [2/16] (narrow) %v327_v3, 32  ;;  %v383_v18 = vld [vmem:[%s960_s4 + $0x48] sm:$0xff]  ;;  %v384_v20 = vld [vmem:[%s960_s4 + $0x50] sm:$0xff]  ;;  %v385_v22 = vld [vmem:[%s960_s4 + $0x58] sm:$0xff] }
  0x23   : > { %v335_v19 = vld [vmem:[%s965_s7 + $0x48] sm:$0xff]  ;;  %v336_v21 = vld [vmem:[%s965_s7 + $0x50] sm:$0xff]  ;;  %v337_v23 = vld [vmem:[%s965_s7 + $0x58] sm:$0xff] }
  0x24   : > { %v386_v24 = vld [vmem:[%s960_s4 + $0x60] sm:$0xff]  ;;  %v387_v26 = vld [vmem:[%s960_s4 + $0x68] sm:$0xff]  ;;  %v388_v28 = vld [vmem:[%s960_s4 + $0x70] sm:$0xff] }
  0x25   : > { %392 = vxpose.xlu1.b32.cont [3/16] (narrow) %v376_v4, 32  ;;  %v338_v25 = vld [vmem:[%s965_s7 + $0x60] sm:$0xff]  ;;  %v339_v27 = vld [vmem:[%s965_s7 + $0x68] sm:$0xff]  ;;  %v340_v29 = vld [vmem:[%s965_s7 + $0x70] sm:$0xff] }
  0x26   : > { %344 = vxpose.xlu0.b32.cont [3/16] (narrow) %v328_v5, 32  ;;  %v389_v30 = vld [vmem:[%s960_s4 + $0x78] sm:$0xff] }
  0x27   : > { %v341_v31 = vld [vmem:[%s965_s7 + $0x78] sm:$0xff] }
  0x29   : > { %393 = vxpose.xlu1.b32.cont [4/16] (narrow) %v377_v6, 32 }
  0x2a   : > { %345 = vxpose.xlu0.b32.cont [4/16] (narrow) %v329_v7, 32 }
  0x2d   : > { %394 = vxpose.xlu1.b32.cont [5/16] (narrow) %v378_v8, 32 }
  0x2e   : > { %346 = vxpose.xlu0.b32.cont [5/16] (narrow) %v330_v9, 32 }
  0x31   : > { %395 = vxpose.xlu1.b32.cont [6/16] (narrow) %v379_v10, 32 }
  0x32   : > { %347 = vxpose.xlu0.b32.cont [6/16] (narrow) %v331_v11, 32 }
  0x35   : > { %396 = vxpose.xlu1.b32.cont [7/16] (narrow) %v380_v12, 32 }
  0x36   : > { %348 = vxpose.xlu0.b32.cont [7/16] (narrow) %v332_v13, 32 }
  0x39   : > { %397 = vxpose.xlu1.b32.cont [8/16] (narrow) %v381_v14, 32 }
  0x3a   : > { %349 = vxpose.xlu0.b32.cont [8/16] (narrow) %v333_v15, 32 }
  0x3d   : > { %398 = vxpose.xlu1.b32.cont [9/16] (narrow) %v382_v16, 32 }
  0x3e   : > { %350 = vxpose.xlu0.b32.cont [9/16] (narrow) %v334_v17, 32 }
  0x41   : > { %399 = vxpose.xlu1.b32.cont [10/16] (narrow) %v383_v18, 32 }
  0x42   : > { %351 = vxpose.xlu0.b32.cont [10/16] (narrow) %v335_v19, 32 }
  0x45   : > { %400 = vxpose.xlu1.b32.cont [11/16] (narrow) %v384_v20, 32 }
  0x46   : > { %352 = vxpose.xlu0.b32.cont [11/16] (narrow) %v336_v21, 32 }
  0x49   : > { %401 = vxpose.xlu1.b32.cont [12/16] (narrow) %v385_v22, 32 }
  0x4a   : > { %353 = vxpose.xlu0.b32.cont [12/16] (narrow) %v337_v23, 32 }
  0x4d   : > { %402 = vxpose.xlu1.b32.cont [13/16] (narrow) %v386_v24, 32 }
  0x4e   : > { %354 = vxpose.xlu0.b32.cont [13/16] (narrow) %v338_v25, 32 }
  0x51   : > { %403 = vxpose.xlu1.b32.cont [14/16] (narrow) %v387_v26, 32 }
  0x52   : > { %355 = vxpose.xlu0.b32.cont [14/16] (narrow) %v339_v27, 32 }
  0x55   : > { %404 = vxpose.xlu1.b32.cont [15/16] (narrow) %v388_v28, 32 }
  0x56   : > { %356 = vxpose.xlu0.b32.cont [15/16] (narrow) %v340_v29, 32 }
  0x59   : > { %405 = vxpose.xlu1.b32.end [16/16] (narrow) %v389_v30, 32 }
  0x5a   : > { %357 = vxpose.xlu0.b32.end [16/16] (narrow) %v341_v31, 32 }
  0x99   : > { %v406_v32 = vpop.trf.xlu1 }
  0x9a   : > { %v358_v33 = vpop.trf.xlu0  ;;  %v436_v39 = vmul.f32 %v406_v32, %v406_v32 }
  0x9b   : > { %v423_v40 = vmul.f32 %v358_v33, %v358_v33  ;;  %v449_v43 = vmul.f32 %v406_v32, %v358_v33 }
  0x9d   : > { %v407_v34 = vpop.trf.xlu1 }
  0x9e   : > { %v359_v35 = vpop.trf.xlu0  ;;  %v437_v36 = vmul.f32 %v407_v34, %v407_v34 }
  0x9f   : > { %v424_v37 = vmul.f32 %v359_v35, %v359_v35  ;;  %v450_v38 = vmul.f32 %v407_v34, %v359_v35 }
  0xa0   : > { %v440_v47 = vadd.f32 %v437_v36, %v436_v39 }
  0xa1   : > { %v408_v41 = vpop.trf.xlu1  ;;  %v427_v48 = vadd.f32 %v424_v37, %v423_v40  ;;  %v453_v49 = vadd.f32 %v450_v38, %v449_v43 }
  0xa2   : > { %v360_v42 = vpop.trf.xlu0  ;;  %v438_v44 = vmul.f32 %v408_v41, %v408_v41 }
  0xa3   : > { %v425_v45 = vmul.f32 %v360_v42, %v360_v42  ;;  %v451_v46 = vmul.f32 %v408_v41, %v360_v42 }
  0xa4   : > { %v441_v50 = vadd.f32 %v440_v47, %v438_v44  ;;  %v422_v44 = vld [vmem:[%s317_s10] sm:$0x1] }
  0xa5   : > { %v428_v51 = vadd.f32 %v427_v48, %v425_v45  ;;  %v409_v52 = vpop.trf.xlu1  ;;  %v454_v54 = vadd.f32 %v453_v49, %v451_v46  ;;  %v511_v47 = vand.u32 2147483647, %v422_v44 }
  0xa6   : > { %v361_v53 = vpop.trf.xlu0  ;;  %v439_v55 = vmul.f32 %v409_v52, %v409_v52 }
  0xa7   : > { %v426_v56 = vmul.f32 %v361_v53, %v361_v53  ;;  %v452_v57 = vmul.f32 %v409_v52, %v361_v53 }
  0xa8   : > { %v442_v58 = vadd.f32 %v441_v50, %v439_v55  ;;  %v512_v50 = vmax.f32 %v511_v47, 1e-15 }
  0xa9   : > { %v429_v59 = vadd.f32 %v428_v51, %v426_v56  ;;  %v455_v60 = vadd.f32 %v454_v54, %v452_v57  ;;  %v873_v51 = vmov 0.0  }
  0xaa   : > { %v443_v61 = vrot.slane %v442_v58, 4  ;;  %325 = vst [vmem:[%s1012_s19] sm:$0x1] %v873_v51 }
  0xab   : > { %v430_v62 = vrot.slane %v429_v59, 4  ;;  %v456_v63 = vrot.slane %v455_v60, 4 }
  0xac   : > { %v444_v0 = vadd.f32 %v443_v61, %v442_v58 }
  0xad   : > { %v431_v1 = vadd.f32 %v430_v62, %v429_v59  ;;  %v457_v2 = vadd.f32 %v456_v63, %v455_v60 }
  0xae   : > { %v445_v3 = vrot.slane %v444_v0, 2 }
  0xaf   : > { %v432_v4 = vrot.slane %v431_v1, 2  ;;  %v458_v5 = vrot.slane %v457_v2, 2 }
  0xb0   : > { %v446_v6 = vadd.f32 %v445_v3, %v444_v0 }
  0xb1   : > { %v433_v7 = vadd.f32 %v432_v4, %v431_v1  ;;  %v459_v8 = vadd.f32 %v458_v5, %v457_v2 }
  0xb2   : > { %v447_v9 = vrot.slane %v446_v6, 1 }
  0xb3   : > { %v434_v10 = vrot.slane %v433_v7, 1  ;;  %v460_v11 = vrot.slane %v459_v8, 1 }
  0xb4   : > { %v448_v13 = vadd.f32 %v447_v9, %v446_v6 }
  0xb5   : > { %v461_v12 = vadd.f32 %v460_v11, %v459_v8  ;;  %v435_v14 = vadd.f32 %v434_v10, %v433_v7 }
  0xb7   : > { %v462_v15 = vsub.f32 0.0, %v461_v12  ;;  %v476_v18 = vmul.f32 %v448_v13, %v435_v14  ;;  %v466_v20 = vsub.f32 1.0, %v435_v14 }
  0xb9   : > { %v463_v16 = vmul.f32 2.0, %v462_v15  ;;  %v473_v26 = vmul.f32 %v466_v20, %v466_v20 }
  0xbb   : > { %v464_v17 = vadd.f32 1.0, %v463_v16  ;;  %v474_v30 = vmul.f32 %v473_v26, %v448_v13 }
  0xbd   : > { %v465_v19 = vadd.f32 %v464_v17, %v448_v13  ;;  %v477_v21 = vadd.f32 %v476_v18, %v464_v17 }
  0xbf   : > { %v467_v22 = vmul.f32 %v465_v19, %v465_v19  ;;  %v469_v23 = vmul.f32 2.0, %v465_v19  ;;  %v478_v24 = vmax.f32 %v477_v21, 1e-15 }
  0xc1   : > { %v470_v25 = vmul.f32 %v469_v23, %v466_v20  ;;  %775 = vrcp.f32 %v478_v24  ;;  %v468_v27 = vmul.f32 %v467_v22, %v435_v14 }
  0xc3   : > { %v471_v28 = vmul.f32 %v470_v25, %v462_v15 }
  0xc5   : > { %v472_v29 = vadd.f32 %v471_v28, %v468_v27 }
  0xc7   : > { %v475_v31 = vadd.f32 %v474_v30, %v472_v29 }
  0xc9   : > { %v479_v32 = vmax.f32 %v475_v31, 0.0 }
  0xcb   : > { %777 = vrsqrt.f32 %v479_v32  ;;  %vm482_vm0 = vcmp.eq.f32.partialorder %v479_v32, inf  ;;  %v485_v41 = vand.u32 2147483648, %v479_v32  ;;  %vm484_vm1 = vcmp.eq.f32.partialorder %v479_v32, 0.0 }
  0xce   : > { %v776_v33 = vpop.eup %775 }
  0xcf   : > { %v488_v34 = vmul.f32 %v776_v33, %v478_v24 }
  0xd1   : > { %v489_v35 = vsub.f32 2.0, %v488_v34 }
  0xd3   : > { %v490_v36 = vmul.f32 %v776_v33, %v489_v35 }
  0xd5   : > { %v491_v37 = vmul.f32 %v490_v36, %v478_v24 }
  0xd7   : > { %v492_v38 = vsub.f32 2.0, %v491_v37 }
  0xd8   : > { %v778_v39 = vpop.eup %777 }
  0xd9   : > { %v481_v40 = vmul.f32 %v778_v39, %v479_v32  ;;  %v493_v43 = vmul.f32 %v492_v38, %v490_v36 }
  0xdb   : > { %v483_v42 = vsel %vm482_vm0, %v479_v32, %v481_v40 }
  0xdc   : > { %v486_v45 = vsel %vm484_vm1, %v485_v41, %v483_v42 }
  0xdd   : > { %v494_v46 = vmul.f32 %v493_v43, %v486_v45 }
  0xdf   : > { %v708_v48 = vclamps-f32 %v494_v46, 0.99999 }
  0xe1   : > { %v498_v49 = vsub.f32 1.0, %v708_v48  ;;  %v497_v61 = vadd.f32 1.0, %v708_v48 }
  0xe3   : > { %779 = vrcp.f32 %v498_v49 }
  0xe4   : > { %781 = vrcp.f32 %v512_v50 }
  0xe5   : > { %783 = vtanh.f32 %v512_v50 }
  0xf0   : > { %v780_v52 = vpop.eup %779 }
  0xf1   : > { %v500_v53 = vmul.f32 %v780_v52, %v498_v49  ;;  %v782_v55 = vpop.eup %781 }
  0xf2   : > { %v516_v57 = vmul.f32 %v782_v55, %v512_v50  ;;  %v784_v3 = vpop.eup %783 }
  0xf3   : > { %v501_v54 = vsub.f32 2.0, %v500_v53  ;;  %v514_v4 = vmul.f32 %v784_v3, %v422_v44 }
  0xf4   : > { %v517_v60 = vsub.f32 2.0, %v516_v57 }
  0xf5   : > { %v502_v56 = vmul.f32 %v780_v52, %v501_v54 }
  0xf6   : > { %v518_v0 = vmul.f32 %v782_v55, %v517_v60 }
  0xf7   : > { %v503_v58 = vmul.f32 %v502_v56, %v498_v49 }
  0xf8   : > { %v519_v1 = vmul.f32 %v518_v0, %v512_v50 }
  0xf9   : > { %v504_v59 = vsub.f32 2.0, %v503_v58 }
  0xfa   : > { %v520_v2 = vsub.f32 2.0, %v519_v1 }
  0xfb   : > { %v505_v62 = vmul.f32 %v504_v59, %v502_v56 }
  0xfc   : > { %v521_v5 = vmul.f32 %v520_v2, %v518_v0 }
  0xfd   : > { %v506_v63 = vmul.f32 %v505_v62, %v497_v61 }
  0xfe   : > { %v522_v8 = vmul.f32 %v521_v5, %v514_v4 }
  0xff   : > { %785 = vlog2.f32 %v506_v63 }
 0x100   : > { %v524_v12 = vmul.f32 %v522_v8, %v522_v8 }
 0x10c   : > { %v786_v6 = vpop.eup %785 }
 0x10d   : > { %v508_v7 = vmul.f32 0.6931472, %v786_v6 }
 0x10f   : > { %v509_v9 = vmul.f32 0.5, %v508_v7 }
 0x111   : > { %v510_v10 = vmul.f32 2.0, %v509_v9 }
 0x113   : > { %v525_v11 = vmul.f32 %v522_v8, %v510_v10  ;;  %v523_v13 = vmul.f32 %v510_v10, %v510_v10 }
 0x115   : > { %v526_v14 = vsub.f32 0.0, %v525_v11  ;;  %v540_v17 = vmul.f32 %v524_v12, %v523_v13  ;;  %v530_v19 = vsub.f32 1.0, %v523_v13 }
 0x117   : > { %v527_v15 = vmul.f32 2.0, %v526_v14  ;;  %v537_v25 = vmul.f32 %v530_v19, %v530_v19 }
 0x119   : > { %v528_v16 = vadd.f32 1.0, %v527_v15  ;;  %v538_v29 = vmul.f32 %v537_v25, %v524_v12 }
 0x11b   : > { %v529_v18 = vadd.f32 %v528_v16, %v524_v12  ;;  %v541_v20 = vadd.f32 %v540_v17, %v528_v16 }
 0x11d   : > { %v531_v21 = vmul.f32 %v529_v18, %v529_v18  ;;  %v533_v22 = vmul.f32 2.0, %v529_v18  ;;  %v542_v23 = vmax.f32 %v541_v20, 1e-15 }
 0x11f   : > { %v534_v24 = vmul.f32 %v533_v22, %v530_v19  ;;  %787 = vrcp.f32 %v542_v23  ;;  %v532_v26 = vmul.f32 %v531_v21, %v523_v13 }
 0x121   : > { %v535_v27 = vmul.f32 %v534_v24, %v526_v14 }
 0x123   : > { %v536_v28 = vadd.f32 %v535_v27, %v532_v26 }
 0x125   : > { %v539_v30 = vadd.f32 %v538_v29, %v536_v28 }
 0x127   : > { %v543_v31 = vmax.f32 %v539_v30, 0.0 }
 0x129   : > { %789 = vrsqrt.f32 %v543_v31  ;;  %vm546_vm2 = vcmp.eq.f32.partialorder %v543_v31, inf  ;;  %v549_v40 = vand.u32 2147483648, %v543_v31  ;;  %vm548_vm3 = vcmp.eq.f32.partialorder %v543_v31, 0.0 }
 0x12c   : > { %v788_v32 = vpop.eup %787 }
 0x12d   : > { %v552_v33 = vmul.f32 %v788_v32, %v542_v23 }
 0x12f   : > { %v553_v34 = vsub.f32 2.0, %v552_v33 }
 0x131   : > { %v554_v35 = vmul.f32 %v788_v32, %v553_v34 }
 0x133   : > { %v555_v36 = vmul.f32 %v554_v35, %v542_v23 }
 0x135   : > { %v556_v37 = vsub.f32 2.0, %v555_v36 }
 0x136   : > { %v790_v38 = vpop.eup %789 }
 0x137   : > { %v545_v39 = vmul.f32 %v790_v38, %v543_v31  ;;  %v557_v42 = vmul.f32 %v556_v37, %v554_v35 }
 0x139   : > { %v547_v41 = vsel %vm546_vm2, %v543_v31, %v545_v39 }
 0x13a   : > { %v550_v43 = vsel %vm548_vm3, %v549_v40, %v547_v41 }
 0x13b   : > { %v558_v44 = vmul.f32 %v557_v42, %v550_v43 }
 0x13d   : > { %v709_v45 = vclamps-f32 %v558_v44, 0.99999 }
 0x13f   : > { %v562_v46 = vsub.f32 1.0, %v709_v45  ;;  %v561_v53 = vadd.f32 1.0, %v709_v45 }
 0x141   : > { %791 = vrcp.f32 %v562_v46 }
 0x14e   : > { %v792_v47 = vpop.eup %791 }
 0x14f   : > { %v564_v48 = vmul.f32 %v792_v47, %v562_v46 }
 0x151   : > { %v565_v49 = vsub.f32 2.0, %v564_v48 }
 0x153   : > { %v566_v50 = vmul.f32 %v792_v47, %v565_v49 }
 0x155   : > { %v567_v51 = vmul.f32 %v566_v50, %v562_v46 }
 0x157   : > { %v568_v52 = vsub.f32 2.0, %v567_v51 }
 0x159   : > { %v569_v54 = vmul.f32 %v568_v52, %v566_v50 }
 0x15b   : > { %v570_v55 = vmul.f32 %v569_v54, %v561_v53 }
 0x15d   : > { %793 = vlog2.f32 %v570_v55 }
 0x16a   : > { %v794_v56 = vpop.eup %793 }
 0x16b   : > { %v572_v57 = vmul.f32 0.6931472, %v794_v56  ;;  %581 = sbr.rel (%p711_p13) target bundleno = 372 (0x174), region = 40 }
 0x16d   : > { %v573_v58 = vmul.f32 0.5, %v572_v57 }
 0x16f   : > { %v574_v59 = vmul.f32 2.0, %v573_v58 }
 0x170   : > { %v582_v60 = vld [vmem:[%s1012_s19] sm:$0x1] }
 0x171   : > { %v583_v61 = vadd.f32 %v582_v60, %v574_v59 }
 0x173   : > { %584 = vst [vmem:[%s1012_s19] sm:$0x1] %v583_v61 }
 0x174 PF: > { %p712_p0 = scmp.le.s32.totalorder %s1017_s21, 200 }
 0x176   : > { %588 = sbr.rel (%p712_p0) target bundleno = 390 (0x186), region = 44 }
 0x17b   : > { %v590_v62 = vlaneseq  ;;  %v592_v63 = vstv %s717_s18  ;;  %v594_v2 = vld [vmem:[%s1012_s19] sm:$0x1] }
 0x17d   : > { %v591_v0 = vand.u32 127, %v590_v62 }
 0x17f   : > { %v593_v1 = vadd.s32 %v592_v63, %v591_v0 }
 0x181   : > { %vm595_vm4 = vcmp.lt.s32.totalorder %v593_v1, 200 }
 0x182   : > { %v596_v3 = vsel %vm595_vm4, %v574_v59, 0.0 }
 0x183   : > { %v597_v4 = vadd.f32 %v596_v3, %v594_v2 }
 0x185   : > { %598 = vst [vmem:[%s1012_s19] sm:$0x1] %v597_v4 }
 0x186 PF: > { %s714_s23 = sshll.u32 %s863_s15, 4  ;;  %s612_s29 = sshll.u32 %s1012_s19, 4  ;;  %s613_s29 = int_to_ptr.vmem [resolvable:$true] %s612_s29 }
 0x187   : > { %s610_s28 = scalar_lea.hbm %s1071_s3, %s714_s23  ;;  %s600_s30 = scalar_lea.sflag [#allocation3], %s270_s11 }
 0x188   : > { %s795_s4 = scalar_lea.vmem %s613_s29, 16  ;;  %s874_s5 = smov [#allocation2]  }
 0x189   : > { %p796_p1 = scmp.ne.s32.totalorder %s613_s29, %s795_s4  ;;  %s799_s6 = sshll.u32 %s874_s5, 4  ;;  %s800_s6 = int_to_ptr.vmem [resolvable:$false] %s799_s6 }
 0x18a   : > { %s801_s7 = scalar_lea.vmem %s800_s6, 32  ;;  %p802_p5 = scmp.lt.s32.totalorder %s613_s29, %s800_s6 }
 0x18b   : > { %p797_p2 = pnand %p796_p1, %p935_p4  ;;  %p803_p6 = scmp.lt.s32.totalorder %s801_s7, %s795_s4 }
 0x18d   : > { %p798_p3 = pneg %p797_p2  ;;  %p804_p7 = por %p803_p6, %p802_p5 }
 0x18f   : > { %p805_p9 = pnand %p804_p7, %p798_p3 }
 0x191   : > { %808 = shalt.err (!%p805_p9)
}
 0x192   : > { %s809_s15 = scalar_lea.hbm %s610_s28, 16  ;;  %s813_s10 = scalar_lea.hbm %s1071_s3, 32 }
 0x193   : > { %p810_p10 = scmp.ne.s32.totalorder %s610_s28, %s809_s15  ;;  %p814_p13 = scmp.lt.s32.totalorder %s610_s28, %s1071_s3 }
 0x194   : > { %p815_p0 = scmp.lt.s32.totalorder %s813_s10, %s809_s15 }
 0x195   : > { %p811_p11 = pnand %p810_p10, %p935_p4 }
 0x196   : > { %p816_p1 = por %p815_p0, %p814_p13 }
 0x197   : > { %p812_p12 = pneg %p811_p11 }
 0x199   : > { %p817_p2 = pnand %p816_p1, %p812_p12 }
 0x19b   : > { %820 = shalt.err (!%p817_p2)
}
 0x19c   : > { %719 = dma.vmem_to_hbm [thread:$0]  (%p935_p4), %s613_s29, 16, %s610_s28, %s600_s30  }
 0x19d PF: > { %p725_p3 = scmp.ge.s32.totalorder %s871_s17, 2  ;;  %s624_s19 = sand.u32 1, %s851_s12  }
 0x19e   : > { %s625_s21 = scalar_lea.sflag [#allocation3], %s624_s19 }
 0x19f   : > { %p722_p5 = pnand %p725_p3, %p942_p8 }
 0x1a1   : > { %p723_p6 = pneg %p722_p5 }
 0x1a3   : > { %846 = dma.done.wait (%p723_p6), %s625_s21, 16  }
 0x1a4   : > { %848 = vsyncadd (%p723_p6), %s625_s21, 4294967280  ;;  %s16_s17 = sadd.s32 1, %s871_s17   ;;  %s1074_s12 = smov %s855_s13 }
 0x1a5   : > { %p13_p7 = scmp.ge.s32.totalorder %s16_s17, 4   ;;  %s1075_s13 = smov %s859_s14 }
 0x1a6   : > { %s1076_s14 = smov %s948_s25  ;;  %s1077_s15 = smov %s867_s16 }
 0x1a7   : > { %s1078_s16 = smov %s1080_s20  ;;  %15 = sbr.rel (!%p13_p7) target bundleno = 4 (0x4), region = 85 }
 0x1ac   :  { %629 = vsyncpa [#allocation3], 1 }
 0x1ad   :  { %631 = vsyncpa [#allocation3 + $0x1], 1 }

</bundles_post_ra>
